<compile_context>
chip_gen: v7x
topology: tpu7x:2x2x1
jax: 0.10.0
libtpu: 0.0.40
codegen_flags: <defaults>
</compile_context>

<pallas_src>
import jax
import jax.numpy as jnp
import numpy as np
from jax.experimental import pallas as pl
from jax.experimental.pallas import tpu as pltpu

K = 5                        # number of object slots ("k" in the source)
ACTION_DIM = 4
POSE_DIM = 6 * K             # 30
LANE = 128
MAX_ROWS_PER_STEP = 64       # 64 rows x 128 lanes = 8K f32 per channel slab -> no vreg spills


# ---------------------------------------------------------------------------
# Pallas kernel: point-cloud transform  x_new = sum_j mask_j * (R_j @ x + T_j)
#   Channels live as dense (T, 128) slabs; R/T scalars in SMEM; static K unroll.
# ---------------------------------------------------------------------------
def _transform_kernel(dR_ref, dT_ref, x_ref, m_ref, o_ref):
    # dR_ref: SMEM (K*9,) row-major 3x3 rotation per slot; dT_ref: SMEM (K*3,)
    # x_ref : VMEM (3, T, 128);  m_ref: VMEM (K, T, 128);  o_ref: VMEM (3, T, 128)
    x0 = x_ref[0]
    x1 = x_ref[1]
    x2 = x_ref[2]
    acc0 = jnp.zeros_like(x0)
    acc1 = jnp.zeros_like(x1)
    acc2 = jnp.zeros_like(x2)
    for j in range(K):                                   # static unroll, K = 5
        mj = m_ref[j]
        r, t = 9 * j, 3 * j
        acc0 += mj * (dR_ref[r + 0] * x0 + dR_ref[r + 1] * x1 + dR_ref[r + 2] * x2 + dT_ref[t + 0])
        acc1 += mj * (dR_ref[r + 3] * x0 + dR_ref[r + 4] * x1 + dR_ref[r + 5] * x2 + dT_ref[t + 1])
        acc2 += mj * (dR_ref[r + 6] * x0 + dR_ref[r + 7] * x1 + dR_ref[r + 8] * x2 + dT_ref[t + 2])
    o_ref[0] = acc0
    o_ref[1] = acc1
    o_ref[2] = acc2


def transform_point_cloud_pallas(x_flat, m_flat, delta_R, delta_T):
    hw = x_flat.shape[-1]
    rows = pl.cdiv(hw, LANE)
    rows8 = ((rows + 7) // 8) * 8                        # dense sublanes
    if rows8 <= MAX_ROWS_PER_STEP:
        tile = rows8
        rows_p = rows8
    else:
        tile = MAX_ROWS_PER_STEP
        rows_p = ((rows8 + tile - 1) // tile) * tile
    hw_p = rows_p * LANE
    if hw_p != hw:
        x_flat = jnp.pad(x_flat, ((0, 0), (0, hw_p - hw)))
        m_flat = jnp.pad(m_flat, ((0, 0), (0, hw_p - hw)))   # mask pads with 0 -> padded out = 0
    x3 = x_flat.reshape(3, rows_p, LANE)
    m3 = m_flat.reshape(K, rows_p, LANE)

    flops = 30 * K * hw_p
    bytes_accessed = 4 * ((3 + K + 3) * hw_p + K * 12)
    smem_spec = pl.BlockSpec(memory_space=pltpu.MemorySpace.SMEM)

    out = pl.pallas_call(
        _transform_kernel,
        out_shape=jax.ShapeDtypeStruct((3, rows_p, LANE), jnp.float32),
        grid=(rows_p // tile,),
        in_specs=[smem_spec, smem_spec,
                  pl.BlockSpec((3, tile, LANE), lambda i: (0, i, 0)),
                  pl.BlockSpec((K, tile, LANE), lambda i: (0, i, 0))],
        out_specs=pl.BlockSpec((3, tile, LANE), lambda i: (0, i, 0)),
        compiler_params=pltpu.CompilerParams(dimension_semantics=("parallel",)),
        cost_estimate=pl.CostEstimate(flops=flops, transcendentals=0,
                                      bytes_accessed=bytes_accessed),
    )(delta_R.reshape(-1), delta_T.reshape(-1), x3, m3)
    return out.reshape(3, hw_p)[:, :hw]


# ---------------------------------------------------------------------------
# One-time algebraic fold of the activation-free PoseTransitionNetwork.
#   delta_poses = poses @ W_p + action @ W_u + b       (30x30, 4x30, 1x30)
# ---------------------------------------------------------------------------
def fold_pose_mlp_params(p):
    hp = jax.lax.Precision.HIGHEST
    dot = lambda a, b: jnp.dot(a, b, precision=hp)
    a_p = dot(p["w1a"], p["w2a"])                        # (30, 256)
    c_p = dot(p["b1a"], p["w2a"]) + p["b2a"]             # (1, 256)
    a_u = dot(p["w1b"], p["w2b"])                        # (4, 256)
    c_u = dot(p["b1b"], p["w2b"]) + p["b2b"]             # (1, 256)
    w1ab_p, w1ab_u = p["w1ab"][:256], p["w1ab"][256:]
    tail = dot(p["w2ab"], p["w3ab"])                     # (128, 30)
    w_p = dot(dot(a_p, w1ab_p), tail)                    # (30, 30)
    w_u = dot(dot(a_u, w1ab_u), tail)                    # (4, 30)
    b = (dot(dot(c_p, w1ab_p) + dot(c_u, w1ab_u) + p["b1ab"], tail)
         + dot(p["b2ab"], p["w3ab"]) + p["b3ab"])        # (1, 30)
    return dict(w_p=w_p, w_u=w_u, b=b)


# ---------------------------------------------------------------------------
# Plain-JAX glue (tiny 3x3 / 30-dim algebra — no Pallas value at this size)
# ---------------------------------------------------------------------------
# TODO(synk): axisAngleToRotationMatrix_batched / rotationMatrixToAxisAngle_batched are
#             external dependencies not defined in the source file; standard Rodrigues
#             formulas are used here.
def axis_angle_to_rotation_matrix_batched(v):
    theta = jnp.sqrt(jnp.sum(v * v, axis=-1))
    safe = jnp.where(theta > 1e-8, theta, 1.0)
    u = v / safe[:, None]
    ux, uy, uz = u[:, 0], u[:, 1], u[:, 2]
    zeros = jnp.zeros_like(ux)
    kmat = jnp.stack([
        jnp.stack([zeros, -uz, uy], axis=-1),
        jnp.stack([uz, zeros, -ux], axis=-1),
        jnp.stack([-uy, ux, zeros], axis=-1),
    ], axis=-2)                                          # (k, 3, 3)
    s = jnp.sin(theta)[:, None, None]
    c = jnp.cos(theta)[:, None, None]
    eye = jnp.broadcast_to(jnp.eye(3, dtype=v.dtype), kmat.shape)
    rot = eye + s * kmat + (1.0 - c) * jnp.matmul(kmat, kmat)
    return jnp.where(theta[:, None, None] > 1e-8, rot, eye)


def rotation_matrix_to_axis_angle_batched(r):
    tr = r[:, 0, 0] + r[:, 1, 1] + r[:, 2, 2]
    theta = jnp.arccos(jnp.clip((tr - 1.0) * 0.5, -1.0, 1.0))
    w = jnp.stack([r[:, 2, 1] - r[:, 1, 2],
                   r[:, 0, 2] - r[:, 2, 0],
                   r[:, 1, 0] - r[:, 0, 1]], axis=-1)    # 2 sin(theta) * axis
    sin_t = jnp.sin(theta)
    scale = jnp.where(sin_t > 1e-6, theta / (2.0 * sin_t), 0.5)
    return w * scale[:, None]


def add_delta_poses(poses, delta_poses):
    # Faithful to the source, which views `poses` (not delta_poses) a second time,
    # so delta_poses is effectively unused here and delta_R == R.
    poses_u = poses.reshape(K, 6)
    delta_u = poses.reshape(K, 6)
    t = poses_u[:, :3]
    v = poses_u[:, 3:]
    r = axis_angle_to_rotation_matrix_batched(v)
    delta_t = delta_u[:, :3]
    delta_r = axis_angle_to_rotation_matrix_batched(v)
    axang_new = rotation_matrix_to_axis_angle_batched(jnp.matmul(delta_r, r))
    pose_new = jnp.stack([t + delta_t, axang_new], axis=1)   # (K, 2, 3)
    return pose_new.reshape(-1)[None, :]                     # (1, 6K)


def transform_point_cloud(x, mask, delta_poses):
    h, w = x.shape[-2], x.shape[-1]
    dp = delta_poses.reshape(K, 6)
    delta_t = dp[:, :3]
    delta_r = axis_angle_to_rotation_matrix_batched(dp[:, 3:])
    # TODO(synk): sharpen_mask_weights() is stochastic and its result is discarded by the
    #             source (m is immediately overwritten with the raw mask), so it is skipped.
    x_new = transform_point_cloud_pallas(x.reshape(3, h * w), mask.reshape(K, h * w),
                                         delta_r, delta_t)
    return x_new.reshape(3, h, w)


def transform_network_forward(x, mask, poses, action, folded):
    # TODO(synk): the 30-dim folded affine and the 5x(3x3) axis-angle algebra are sub-vreg
    #             scalar work with no useful Pallas equivalent; they stay in plain JAX and
    #             only the point-cloud transform runs as a Pallas kernel.
    delta_poses = poses @ folded["w_p"] + action @ folded["w_u"] + folded["b"]
    poses_new = add_delta_poses(poses, delta_poses)
    x_new = transform_point_cloud(x, mask, delta_poses)
    return x_new, poses_new


# ---------------------------------------------------------------------------
# Params / reference / test
# ---------------------------------------------------------------------------
def init_params(key):
    ks = jax.random.split(key, 14)
    s = 0.05
    def w(i, shape):
        return jax.random.normal(ks[i], shape, jnp.float32) * s
    return dict(
        w1a=w(0, (POSE_DIM, 128)), b1a=w(1, (1, 128)),
        w2a=w(2, (128, 256)), b2a=w(3, (1, 256)),
        w1b=w(4, (ACTION_DIM, 128)), b1b=w(5, (1, 128)),
        w2b=w(6, (128, 256)), b2b=w(7, (1, 256)),
        w1ab=w(8, (512, 128)), b1ab=w(9, (1, 128)),
        w2ab=w(10, (128, 64)), b2ab=w(11, (1, 64)),
        w3ab=w(12, (64, POSE_DIM)), b3ab=w(13, (1, POSE_DIM)),
    )


def _reference_forward(x, mask, poses, action, p):
    p_enc = (poses @ p["w1a"] + p["b1a"]) @ p["w2a"] + p["b2a"]
    u_enc = (action @ p["w1b"] + p["b1b"]) @ p["w2b"] + p["b2b"]
    l = jnp.concatenate([p_enc, u_enc], axis=-1)
    h = l @ p["w1ab"] + p["b1ab"]
    h = h @ p["w2ab"] + p["b2ab"]
    delta_poses = h @ p["w3ab"] + p["b3ab"]
    poses_new = add_delta_poses(poses, delta_poses)
    dp = delta_poses.reshape(K, 6)
    delta_t = dp[:, :3]
    delta_r = axis_angle_to_rotation_matrix_batched(dp[:, 3:])
    xf = x.reshape(3, -1)
    m = mask.reshape(K, -1)
    y = jnp.einsum("kij,jn->kin", delta_r, xf) + delta_t[:, :, None]
    x_new = jnp.sum(m[:, None, :] * y, axis=0).reshape(x.shape)
    return x_new, poses_new


if __name__ == "__main__":
    key = jax.random.PRNGKey(0)
    kx, km, kp, ka, kw = jax.random.split(key, 5)

    H = W = 16                                  # small test size (production HW just adds grid steps)
    x = jax.random.normal(kx, (3, H, W), jnp.float32)
    mask = jax.nn.softmax(jax.random.normal(km, (K, H, W), jnp.float32), axis=0)
    poses = jax.random.normal(kp, (1, POSE_DIM), jnp.float32) * 0.3
    action = jax.random.normal(ka, (1, ACTION_DIM), jnp.float32)
    params = init_params(kw)
    folded = jax.block_until_ready(fold_pose_mlp_params(params))   # one-time fold at init

    fwd = jax.jit(transform_network_forward)
    x_new, poses_new = fwd(x, mask, poses, action, folded)
    jax.block_until_ready((x_new, poses_new))

    assert x_new.shape == (3, H, W) and poses_new.shape == (1, POSE_DIM)

    x_ref, p_ref = _reference_forward(x, mask, poses, action, params)
    np.testing.assert_allclose(np.asarray(x_new), np.asarray(x_ref), rtol=2e-2, atol=2e-2)
    np.testing.assert_allclose(np.asarray(poses_new), np.asarray(p_ref), rtol=2e-2, atol=2e-2)

    print("KERNEL_OK")
</pallas_src>

<mosaic_0001>
module attributes {stable_mosaic.version = 11 : i64} {
  func.func @_transform_kernel(%arg0: i32, %arg1: memref<45xf32, #tpu.memory_space<smem>>, %arg2: memref<15xf32, #tpu.memory_space<smem>>, %arg3: memref<3x8x128xf32, #tpu.memory_space<vmem>>, %arg4: memref<5x8x128xf32, #tpu.memory_space<vmem>>, %arg5: memref<3x8x128xf32, #tpu.memory_space<vmem>>) attributes {dimension_semantics = [#tpu.dimension_semantics<parallel>], iteration_bounds = array<i64: 1>, scalar_prefetch = 0 : i64, scratch_operands = 0 : i64, tpu.core_type = #tpu.core_type<tc>, window_params = [{transform_indices = @transform_0, window_bounds = array<i64: 45>}, {transform_indices = @transform_1, window_bounds = array<i64: 15>}, {transform_indices = @transform_2, window_bounds = array<i64: 3, 8, 128>}, {transform_indices = @transform_3, window_bounds = array<i64: 5, 8, 128>}, {transform_indices = @transform_4, window_bounds = array<i64: 3, 8, 128>}]} {
    %c0 = arith.constant 0 : index
    %c0_0 = arith.constant 0 : index
    %c0_1 = arith.constant 0 : index
    %0 = vector.load %arg3[%c0, %c0_0, %c0_1] : memref<3x8x128xf32, #tpu.memory_space<vmem>>, vector<1x8x128xf32>
    %1 = vector.shape_cast %0 : vector<1x8x128xf32> to vector<8x128xf32>
    %c1 = arith.constant 1 : index
    %c0_2 = arith.constant 0 : index
    %c0_3 = arith.constant 0 : index
    %2 = vector.load %arg3[%c1, %c0_2, %c0_3] : memref<3x8x128xf32, #tpu.memory_space<vmem>>, vector<1x8x128xf32>
    %3 = vector.shape_cast %2 : vector<1x8x128xf32> to vector<8x128xf32>
    %c2 = arith.constant 2 : index
    %c0_4 = arith.constant 0 : index
    %c0_5 = arith.constant 0 : index
    %4 = vector.load %arg3[%c2, %c0_4, %c0_5] : memref<3x8x128xf32, #tpu.memory_space<vmem>>, vector<1x8x128xf32>
    %5 = vector.shape_cast %4 : vector<1x8x128xf32> to vector<8x128xf32>
    %cst = arith.constant 0.000000e+00 : f32
    %6 = vector.broadcast %cst : f32 to vector<8x128xf32>
    %cst_6 = arith.constant 0.000000e+00 : f32
    %7 = vector.broadcast %cst_6 : f32 to vector<8x128xf32>
    %cst_7 = arith.constant 0.000000e+00 : f32
    %8 = vector.broadcast %cst_7 : f32 to vector<8x128xf32>
    %c0_8 = arith.constant 0 : index
    %c0_9 = arith.constant 0 : index
    %c0_10 = arith.constant 0 : index
    %9 = vector.load %arg4[%c0_8, %c0_9, %c0_10] : memref<5x8x128xf32, #tpu.memory_space<vmem>>, vector<1x8x128xf32>
    %10 = vector.shape_cast %9 : vector<1x8x128xf32> to vector<8x128xf32>
    %c0_11 = arith.constant 0 : index
    %11 = memref.load %arg1[%c0_11] : memref<45xf32, #tpu.memory_space<smem>>
    %12 = vector.broadcast %11 : f32 to vector<8x128xf32>
    %13 = arith.mulf %12, %1 : vector<8x128xf32>
    %c1_12 = arith.constant 1 : index
    %14 = memref.load %arg1[%c1_12] : memref<45xf32, #tpu.memory_space<smem>>
    %15 = vector.broadcast %14 : f32 to vector<8x128xf32>
    %16 = arith.mulf %15, %3 : vector<8x128xf32>
    %17 = arith.addf %13, %16 : vector<8x128xf32>
    %c2_13 = arith.constant 2 : index
    %18 = memref.load %arg1[%c2_13] : memref<45xf32, #tpu.memory_space<smem>>
    %19 = vector.broadcast %18 : f32 to vector<8x128xf32>
    %20 = arith.mulf %19, %5 : vector<8x128xf32>
    %21 = arith.addf %17, %20 : vector<8x128xf32>
    %c0_14 = arith.constant 0 : index
    %22 = memref.load %arg2[%c0_14] : memref<15xf32, #tpu.memory_space<smem>>
    %23 = vector.broadcast %22 : f32 to vector<8x128xf32>
    %24 = arith.addf %21, %23 : vector<8x128xf32>
    %25 = arith.mulf %10, %24 : vector<8x128xf32>
    %26 = arith.addf %6, %25 : vector<8x128xf32>
    %c3 = arith.constant 3 : index
    %27 = memref.load %arg1[%c3] : memref<45xf32, #tpu.memory_space<smem>>
    %28 = vector.broadcast %27 : f32 to vector<8x128xf32>
    %29 = arith.mulf %28, %1 : vector<8x128xf32>
    %c4 = arith.constant 4 : index
    %30 = memref.load %arg1[%c4] : memref<45xf32, #tpu.memory_space<smem>>
    %31 = vector.broadcast %30 : f32 to vector<8x128xf32>
    %32 = arith.mulf %31, %3 : vector<8x128xf32>
    %33 = arith.addf %29, %32 : vector<8x128xf32>
    %c5 = arith.constant 5 : index
    %34 = memref.load %arg1[%c5] : memref<45xf32, #tpu.memory_space<smem>>
    %35 = vector.broadcast %34 : f32 to vector<8x128xf32>
    %36 = arith.mulf %35, %5 : vector<8x128xf32>
    %37 = arith.addf %33, %36 : vector<8x128xf32>
    %c1_15 = arith.constant 1 : index
    %38 = memref.load %arg2[%c1_15] : memref<15xf32, #tpu.memory_space<smem>>
    %39 = vector.broadcast %38 : f32 to vector<8x128xf32>
    %40 = arith.addf %37, %39 : vector<8x128xf32>
    %41 = arith.mulf %10, %40 : vector<8x128xf32>
    %42 = arith.addf %7, %41 : vector<8x128xf32>
    %c6 = arith.constant 6 : index
    %43 = memref.load %arg1[%c6] : memref<45xf32, #tpu.memory_space<smem>>
    %44 = vector.broadcast %43 : f32 to vector<8x128xf32>
    %45 = arith.mulf %44, %1 : vector<8x128xf32>
    %c7 = arith.constant 7 : index
    %46 = memref.load %arg1[%c7] : memref<45xf32, #tpu.memory_space<smem>>
    %47 = vector.broadcast %46 : f32 to vector<8x128xf32>
    %48 = arith.mulf %47, %3 : vector<8x128xf32>
    %49 = arith.addf %45, %48 : vector<8x128xf32>
    %c8 = arith.constant 8 : index
    %50 = memref.load %arg1[%c8] : memref<45xf32, #tpu.memory_space<smem>>
    %51 = vector.broadcast %50 : f32 to vector<8x128xf32>
    %52 = arith.mulf %51, %5 : vector<8x128xf32>
    %53 = arith.addf %49, %52 : vector<8x128xf32>
    %c2_16 = arith.constant 2 : index
    %54 = memref.load %arg2[%c2_16] : memref<15xf32, #tpu.memory_space<smem>>
    %55 = vector.broadcast %54 : f32 to vector<8x128xf32>
    %56 = arith.addf %53, %55 : vector<8x128xf32>
    %57 = arith.mulf %10, %56 : vector<8x128xf32>
    %58 = arith.addf %8, %57 : vector<8x128xf32>
    %c1_17 = arith.constant 1 : index
    %c0_18 = arith.constant 0 : index
    %c0_19 = arith.constant 0 : index
    %59 = vector.load %arg4[%c1_17, %c0_18, %c0_19] : memref<5x8x128xf32, #tpu.memory_space<vmem>>, vector<1x8x128xf32>
    %60 = vector.shape_cast %59 : vector<1x8x128xf32> to vector<8x128xf32>
    %c9 = arith.constant 9 : index
    %61 = memref.load %arg1[%c9] : memref<45xf32, #tpu.memory_space<smem>>
    %62 = vector.broadcast %61 : f32 to vector<8x128xf32>
    %63 = arith.mulf %62, %1 : vector<8x128xf32>
    %c10 = arith.constant 10 : index
    %64 = memref.load %arg1[%c10] : memref<45xf32, #tpu.memory_space<smem>>
    %65 = vector.broadcast %64 : f32 to vector<8x128xf32>
    %66 = arith.mulf %65, %3 : vector<8x128xf32>
    %67 = arith.addf %63, %66 : vector<8x128xf32>
    %c11 = arith.constant 11 : index
    %68 = memref.load %arg1[%c11] : memref<45xf32, #tpu.memory_space<smem>>
    %69 = vector.broadcast %68 : f32 to vector<8x128xf32>
    %70 = arith.mulf %69, %5 : vector<8x128xf32>
    %71 = arith.addf %67, %70 : vector<8x128xf32>
    %c3_20 = arith.constant 3 : index
    %72 = memref.load %arg2[%c3_20] : memref<15xf32, #tpu.memory_space<smem>>
    %73 = vector.broadcast %72 : f32 to vector<8x128xf32>
    %74 = arith.addf %71, %73 : vector<8x128xf32>
    %75 = arith.mulf %60, %74 : vector<8x128xf32>
    %76 = arith.addf %26, %75 : vector<8x128xf32>
    %c12 = arith.constant 12 : index
    %77 = memref.load %arg1[%c12] : memref<45xf32, #tpu.memory_space<smem>>
    %78 = vector.broadcast %77 : f32 to vector<8x128xf32>
    %79 = arith.mulf %78, %1 : vector<8x128xf32>
    %c13 = arith.constant 13 : index
    %80 = memref.load %arg1[%c13] : memref<45xf32, #tpu.memory_space<smem>>
    %81 = vector.broadcast %80 : f32 to vector<8x128xf32>
    %82 = arith.mulf %81, %3 : vector<8x128xf32>
    %83 = arith.addf %79, %82 : vector<8x128xf32>
    %c14 = arith.constant 14 : index
    %84 = memref.load %arg1[%c14] : memref<45xf32, #tpu.memory_space<smem>>
    %85 = vector.broadcast %84 : f32 to vector<8x128xf32>
    %86 = arith.mulf %85, %5 : vector<8x128xf32>
    %87 = arith.addf %83, %86 : vector<8x128xf32>
    %c4_21 = arith.constant 4 : index
    %88 = memref.load %arg2[%c4_21] : memref<15xf32, #tpu.memory_space<smem>>
    %89 = vector.broadcast %88 : f32 to vector<8x128xf32>
    %90 = arith.addf %87, %89 : vector<8x128xf32>
    %91 = arith.mulf %60, %90 : vector<8x128xf32>
    %92 = arith.addf %42, %91 : vector<8x128xf32>
    %c15 = arith.constant 15 : index
    %93 = memref.load %arg1[%c15] : memref<45xf32, #tpu.memory_space<smem>>
    %94 = vector.broadcast %93 : f32 to vector<8x128xf32>
    %95 = arith.mulf %94, %1 : vector<8x128xf32>
    %c16 = arith.constant 16 : index
    %96 = memref.load %arg1[%c16] : memref<45xf32, #tpu.memory_space<smem>>
    %97 = vector.broadcast %96 : f32 to vector<8x128xf32>
    %98 = arith.mulf %97, %3 : vector<8x128xf32>
    %99 = arith.addf %95, %98 : vector<8x128xf32>
    %c17 = arith.constant 17 : index
    %100 = memref.load %arg1[%c17] : memref<45xf32, #tpu.memory_space<smem>>
    %101 = vector.broadcast %100 : f32 to vector<8x128xf32>
    %102 = arith.mulf %101, %5 : vector<8x128xf32>
    %103 = arith.addf %99, %102 : vector<8x128xf32>
    %c5_22 = arith.constant 5 : index
    %104 = memref.load %arg2[%c5_22] : memref<15xf32, #tpu.memory_space<smem>>
    %105 = vector.broadcast %104 : f32 to vector<8x128xf32>
    %106 = arith.addf %103, %105 : vector<8x128xf32>
    %107 = arith.mulf %60, %106 : vector<8x128xf32>
    %108 = arith.addf %58, %107 : vector<8x128xf32>
    %c2_23 = arith.constant 2 : index
    %c0_24 = arith.constant 0 : index
    %c0_25 = arith.constant 0 : index
    %109 = vector.load %arg4[%c2_23, %c0_24, %c0_25] : memref<5x8x128xf32, #tpu.memory_space<vmem>>, vector<1x8x128xf32>
    %110 = vector.shape_cast %109 : vector<1x8x128xf32> to vector<8x128xf32>
    %c18 = arith.constant 18 : index
    %111 = memref.load %arg1[%c18] : memref<45xf32, #tpu.memory_space<smem>>
    %112 = vector.broadcast %111 : f32 to vector<8x128xf32>
    %113 = arith.mulf %112, %1 : vector<8x128xf32>
    %c19 = arith.constant 19 : index
    %114 = memref.load %arg1[%c19] : memref<45xf32, #tpu.memory_space<smem>>
    %115 = vector.broadcast %114 : f32 to vector<8x128xf32>
    %116 = arith.mulf %115, %3 : vector<8x128xf32>
    %117 = arith.addf %113, %116 : vector<8x128xf32>
    %c20 = arith.constant 20 : index
    %118 = memref.load %arg1[%c20] : memref<45xf32, #tpu.memory_space<smem>>
    %119 = vector.broadcast %118 : f32 to vector<8x128xf32>
    %120 = arith.mulf %119, %5 : vector<8x128xf32>
    %121 = arith.addf %117, %120 : vector<8x128xf32>
    %c6_26 = arith.constant 6 : index
    %122 = memref.load %arg2[%c6_26] : memref<15xf32, #tpu.memory_space<smem>>
    %123 = vector.broadcast %122 : f32 to vector<8x128xf32>
    %124 = arith.addf %121, %123 : vector<8x128xf32>
    %125 = arith.mulf %110, %124 : vector<8x128xf32>
    %126 = arith.addf %76, %125 : vector<8x128xf32>
    %c21 = arith.constant 21 : index
    %127 = memref.load %arg1[%c21] : memref<45xf32, #tpu.memory_space<smem>>
    %128 = vector.broadcast %127 : f32 to vector<8x128xf32>
    %129 = arith.mulf %128, %1 : vector<8x128xf32>
    %c22 = arith.constant 22 : index
    %130 = memref.load %arg1[%c22] : memref<45xf32, #tpu.memory_space<smem>>
    %131 = vector.broadcast %130 : f32 to vector<8x128xf32>
    %132 = arith.mulf %131, %3 : vector<8x128xf32>
    %133 = arith.addf %129, %132 : vector<8x128xf32>
    %c23 = arith.constant 23 : index
    %134 = memref.load %arg1[%c23] : memref<45xf32, #tpu.memory_space<smem>>
    %135 = vector.broadcast %134 : f32 to vector<8x128xf32>
    %136 = arith.mulf %135, %5 : vector<8x128xf32>
    %137 = arith.addf %133, %136 : vector<8x128xf32>
    %c7_27 = arith.constant 7 : index
    %138 = memref.load %arg2[%c7_27] : memref<15xf32, #tpu.memory_space<smem>>
    %139 = vector.broadcast %138 : f32 to vector<8x128xf32>
    %140 = arith.addf %137, %139 : vector<8x128xf32>
    %141 = arith.mulf %110, %140 : vector<8x128xf32>
    %142 = arith.addf %92, %141 : vector<8x128xf32>
    %c24 = arith.constant 24 : index
    %143 = memref.load %arg1[%c24] : memref<45xf32, #tpu.memory_space<smem>>
    %144 = vector.broadcast %143 : f32 to vector<8x128xf32>
    %145 = arith.mulf %144, %1 : vector<8x128xf32>
    %c25 = arith.constant 25 : index
    %146 = memref.load %arg1[%c25] : memref<45xf32, #tpu.memory_space<smem>>
    %147 = vector.broadcast %146 : f32 to vector<8x128xf32>
    %148 = arith.mulf %147, %3 : vector<8x128xf32>
    %149 = arith.addf %145, %148 : vector<8x128xf32>
    %c26 = arith.constant 26 : index
    %150 = memref.load %arg1[%c26] : memref<45xf32, #tpu.memory_space<smem>>
    %151 = vector.broadcast %150 : f32 to vector<8x128xf32>
    %152 = arith.mulf %151, %5 : vector<8x128xf32>
    %153 = arith.addf %149, %152 : vector<8x128xf32>
    %c8_28 = arith.constant 8 : index
    %154 = memref.load %arg2[%c8_28] : memref<15xf32, #tpu.memory_space<smem>>
    %155 = vector.broadcast %154 : f32 to vector<8x128xf32>
    %156 = arith.addf %153, %155 : vector<8x128xf32>
    %157 = arith.mulf %110, %156 : vector<8x128xf32>
    %158 = arith.addf %108, %157 : vector<8x128xf32>
    %c3_29 = arith.constant 3 : index
    %c0_30 = arith.constant 0 : index
    %c0_31 = arith.constant 0 : index
    %159 = vector.load %arg4[%c3_29, %c0_30, %c0_31] : memref<5x8x128xf32, #tpu.memory_space<vmem>>, vector<1x8x128xf32>
    %160 = vector.shape_cast %159 : vector<1x8x128xf32> to vector<8x128xf32>
    %c27 = arith.constant 27 : index
    %161 = memref.load %arg1[%c27] : memref<45xf32, #tpu.memory_space<smem>>
    %162 = vector.broadcast %161 : f32 to vector<8x128xf32>
    %163 = arith.mulf %162, %1 : vector<8x128xf32>
    %c28 = arith.constant 28 : index
    %164 = memref.load %arg1[%c28] : memref<45xf32, #tpu.memory_space<smem>>
    %165 = vector.broadcast %164 : f32 to vector<8x128xf32>
    %166 = arith.mulf %165, %3 : vector<8x128xf32>
    %167 = arith.addf %163, %166 : vector<8x128xf32>
    %c29 = arith.constant 29 : index
    %168 = memref.load %arg1[%c29] : memref<45xf32, #tpu.memory_space<smem>>
    %169 = vector.broadcast %168 : f32 to vector<8x128xf32>
    %170 = arith.mulf %169, %5 : vector<8x128xf32>
    %171 = arith.addf %167, %170 : vector<8x128xf32>
    %c9_32 = arith.constant 9 : index
    %172 = memref.load %arg2[%c9_32] : memref<15xf32, #tpu.memory_space<smem>>
    %173 = vector.broadcast %172 : f32 to vector<8x128xf32>
    %174 = arith.addf %171, %173 : vector<8x128xf32>
    %175 = arith.mulf %160, %174 : vector<8x128xf32>
    %176 = arith.addf %126, %175 : vector<8x128xf32>
    %c30 = arith.constant 30 : index
    %177 = memref.load %arg1[%c30] : memref<45xf32, #tpu.memory_space<smem>>
    %178 = vector.broadcast %177 : f32 to vector<8x128xf32>
    %179 = arith.mulf %178, %1 : vector<8x128xf32>
    %c31 = arith.constant 31 : index
    %180 = memref.load %arg1[%c31] : memref<45xf32, #tpu.memory_space<smem>>
    %181 = vector.broadcast %180 : f32 to vector<8x128xf32>
    %182 = arith.mulf %181, %3 : vector<8x128xf32>
    %183 = arith.addf %179, %182 : vector<8x128xf32>
    %c32 = arith.constant 32 : index
    %184 = memref.load %arg1[%c32] : memref<45xf32, #tpu.memory_space<smem>>
    %185 = vector.broadcast %184 : f32 to vector<8x128xf32>
    %186 = arith.mulf %185, %5 : vector<8x128xf32>
    %187 = arith.addf %183, %186 : vector<8x128xf32>
    %c10_33 = arith.constant 10 : index
    %188 = memref.load %arg2[%c10_33] : memref<15xf32, #tpu.memory_space<smem>>
    %189 = vector.broadcast %188 : f32 to vector<8x128xf32>
    %190 = arith.addf %187, %189 : vector<8x128xf32>
    %191 = arith.mulf %160, %190 : vector<8x128xf32>
    %192 = arith.addf %142, %191 : vector<8x128xf32>
    %c33 = arith.constant 33 : index
    %193 = memref.load %arg1[%c33] : memref<45xf32, #tpu.memory_space<smem>>
    %194 = vector.broadcast %193 : f32 to vector<8x128xf32>
    %195 = arith.mulf %194, %1 : vector<8x128xf32>
    %c34 = arith.constant 34 : index
    %196 = memref.load %arg1[%c34] : memref<45xf32, #tpu.memory_space<smem>>
    %197 = vector.broadcast %196 : f32 to vector<8x128xf32>
    %198 = arith.mulf %197, %3 : vector<8x128xf32>
    %199 = arith.addf %195, %198 : vector<8x128xf32>
    %c35 = arith.constant 35 : index
    %200 = memref.load %arg1[%c35] : memref<45xf32, #tpu.memory_space<smem>>
    %201 = vector.broadcast %200 : f32 to vector<8x128xf32>
    %202 = arith.mulf %201, %5 : vector<8x128xf32>
    %203 = arith.addf %199, %202 : vector<8x128xf32>
    %c11_34 = arith.constant 11 : index
    %204 = memref.load %arg2[%c11_34] : memref<15xf32, #tpu.memory_space<smem>>
    %205 = vector.broadcast %204 : f32 to vector<8x128xf32>
    %206 = arith.addf %203, %205 : vector<8x128xf32>
    %207 = arith.mulf %160, %206 : vector<8x128xf32>
    %208 = arith.addf %158, %207 : vector<8x128xf32>
    %c4_35 = arith.constant 4 : index
    %c0_36 = arith.constant 0 : index
    %c0_37 = arith.constant 0 : index
    %209 = vector.load %arg4[%c4_35, %c0_36, %c0_37] : memref<5x8x128xf32, #tpu.memory_space<vmem>>, vector<1x8x128xf32>
    %210 = vector.shape_cast %209 : vector<1x8x128xf32> to vector<8x128xf32>
    %c36 = arith.constant 36 : index
    %211 = memref.load %arg1[%c36] : memref<45xf32, #tpu.memory_space<smem>>
    %212 = vector.broadcast %211 : f32 to vector<8x128xf32>
    %213 = arith.mulf %212, %1 : vector<8x128xf32>
    %c37 = arith.constant 37 : index
    %214 = memref.load %arg1[%c37] : memref<45xf32, #tpu.memory_space<smem>>
    %215 = vector.broadcast %214 : f32 to vector<8x128xf32>
    %216 = arith.mulf %215, %3 : vector<8x128xf32>
    %217 = arith.addf %213, %216 : vector<8x128xf32>
    %c38 = arith.constant 38 : index
    %218 = memref.load %arg1[%c38] : memref<45xf32, #tpu.memory_space<smem>>
    %219 = vector.broadcast %218 : f32 to vector<8x128xf32>
    %220 = arith.mulf %219, %5 : vector<8x128xf32>
    %221 = arith.addf %217, %220 : vector<8x128xf32>
    %c12_38 = arith.constant 12 : index
    %222 = memref.load %arg2[%c12_38] : memref<15xf32, #tpu.memory_space<smem>>
    %223 = vector.broadcast %222 : f32 to vector<8x128xf32>
    %224 = arith.addf %221, %223 : vector<8x128xf32>
    %225 = arith.mulf %210, %224 : vector<8x128xf32>
    %226 = arith.addf %176, %225 : vector<8x128xf32>
    %c39 = arith.constant 39 : index
    %227 = memref.load %arg1[%c39] : memref<45xf32, #tpu.memory_space<smem>>
    %228 = vector.broadcast %227 : f32 to vector<8x128xf32>
    %229 = arith.mulf %228, %1 : vector<8x128xf32>
    %c40 = arith.constant 40 : index
    %230 = memref.load %arg1[%c40] : memref<45xf32, #tpu.memory_space<smem>>
    %231 = vector.broadcast %230 : f32 to vector<8x128xf32>
    %232 = arith.mulf %231, %3 : vector<8x128xf32>
    %233 = arith.addf %229, %232 : vector<8x128xf32>
    %c41 = arith.constant 41 : index
    %234 = memref.load %arg1[%c41] : memref<45xf32, #tpu.memory_space<smem>>
    %235 = vector.broadcast %234 : f32 to vector<8x128xf32>
    %236 = arith.mulf %235, %5 : vector<8x128xf32>
    %237 = arith.addf %233, %236 : vector<8x128xf32>
    %c13_39 = arith.constant 13 : index
    %238 = memref.load %arg2[%c13_39] : memref<15xf32, #tpu.memory_space<smem>>
    %239 = vector.broadcast %238 : f32 to vector<8x128xf32>
    %240 = arith.addf %237, %239 : vector<8x128xf32>
    %241 = arith.mulf %210, %240 : vector<8x128xf32>
    %242 = arith.addf %192, %241 : vector<8x128xf32>
    %c42 = arith.constant 42 : index
    %243 = memref.load %arg1[%c42] : memref<45xf32, #tpu.memory_space<smem>>
    %244 = vector.broadcast %243 : f32 to vector<8x128xf32>
    %245 = arith.mulf %244, %1 : vector<8x128xf32>
    %c43 = arith.constant 43 : index
    %246 = memref.load %arg1[%c43] : memref<45xf32, #tpu.memory_space<smem>>
    %247 = vector.broadcast %246 : f32 to vector<8x128xf32>
    %248 = arith.mulf %247, %3 : vector<8x128xf32>
    %249 = arith.addf %245, %248 : vector<8x128xf32>
    %c44 = arith.constant 44 : index
    %250 = memref.load %arg1[%c44] : memref<45xf32, #tpu.memory_space<smem>>
    %251 = vector.broadcast %250 : f32 to vector<8x128xf32>
    %252 = arith.mulf %251, %5 : vector<8x128xf32>
    %253 = arith.addf %249, %252 : vector<8x128xf32>
    %c14_40 = arith.constant 14 : index
    %254 = memref.load %arg2[%c14_40] : memref<15xf32, #tpu.memory_space<smem>>
    %255 = vector.broadcast %254 : f32 to vector<8x128xf32>
    %256 = arith.addf %253, %255 : vector<8x128xf32>
    %257 = arith.mulf %210, %256 : vector<8x128xf32>
    %258 = arith.addf %208, %257 : vector<8x128xf32>
    %c0_41 = arith.constant 0 : index
    %c0_42 = arith.constant 0 : index
    %c0_43 = arith.constant 0 : index
    %259 = vector.load %arg5[%c0_41, %c0_42, %c0_43] : memref<3x8x128xf32, #tpu.memory_space<vmem>>, vector<1x8x128xf32>
    %260 = vector.shape_cast %259 : vector<1x8x128xf32> to vector<8x128xf32>
    %261 = vector.shape_cast %226 : vector<8x128xf32> to vector<1x8x128xf32>
    tpu.vector_store %arg5[%c0_41, %c0_42, %c0_43], %261 {strides = array<i32>} : memref<3x8x128xf32, #tpu.memory_space<vmem>>, vector<1x8x128xf32>,
    %c1_44 = arith.constant 1 : index
    %c0_45 = arith.constant 0 : index
    %c0_46 = arith.constant 0 : index
    %262 = vector.load %arg5[%c1_44, %c0_45, %c0_46] : memref<3x8x128xf32, #tpu.memory_space<vmem>>, vector<1x8x128xf32>
    %263 = vector.shape_cast %262 : vector<1x8x128xf32> to vector<8x128xf32>
    %264 = vector.shape_cast %242 : vector<8x128xf32> to vector<1x8x128xf32>
    tpu.vector_store %arg5[%c1_44, %c0_45, %c0_46], %264 {strides = array<i32>} : memref<3x8x128xf32, #tpu.memory_space<vmem>>, vector<1x8x128xf32>,
    %c2_47 = arith.constant 2 : index
    %c0_48 = arith.constant 0 : index
    %c0_49 = arith.constant 0 : index
    %265 = vector.load %arg5[%c2_47, %c0_48, %c0_49] : memref<3x8x128xf32, #tpu.memory_space<vmem>>, vector<1x8x128xf32>
    %266 = vector.shape_cast %265 : vector<1x8x128xf32> to vector<8x128xf32>
    %267 = vector.shape_cast %258 : vector<8x128xf32> to vector<1x8x128xf32>
    tpu.vector_store %arg5[%c2_47, %c0_48, %c0_49], %267 {strides = array<i32>} : memref<3x8x128xf32, #tpu.memory_space<vmem>>, vector<1x8x128xf32>,
    return
  }
  func.func @transform_0(%arg0: i32) -> i32 {
    %c0_i32 = arith.constant 0 : i32
    %c0_i32_0 = arith.constant 0 : i32
    return %c0_i32 : i32
  }
  func.func @transform_1(%arg0: i32) -> i32 {
    %c0_i32 = arith.constant 0 : i32
    %c0_i32_0 = arith.constant 0 : i32
    return %c0_i32 : i32
  }
  func.func @transform_2(%arg0: i32) -> (i32, i32, i32) {
    %c0_i32 = arith.constant 0 : i32
    %c0_i32_0 = arith.constant 0 : i32
    %c0_i32_1 = arith.constant 0 : i32
    return %c0_i32, %arg0, %c0_i32_0 : i32, i32, i32
  }
  func.func @transform_3(%arg0: i32) -> (i32, i32, i32) {
    %c0_i32 = arith.constant 0 : i32
    %c0_i32_0 = arith.constant 0 : i32
    %c0_i32_1 = arith.constant 0 : i32
    return %c0_i32, %arg0, %c0_i32_0 : i32, i32, i32
  }
  func.func @transform_4(%arg0: i32) -> (i32, i32, i32) {
    %c0_i32 = arith.constant 0 : i32
    %c0_i32_0 = arith.constant 0 : i32
    %c0_i32_1 = arith.constant 0 : i32
    return %c0_i32, %arg0, %c0_i32_0 : i32, i32, i32
  }
}

</mosaic_0001>

<bundles_post_ra>
// kernel: transform_network_forward.1
= control target key start
LH: loop header
LB: loop body
LE: loop exit
PB: predicated region body
PF: predicated region fallthrough
CT: control target
= control target key end

     0   :  { %9 = vsyncpa [#allocation3], 0  ;;  %s692_s0 = inlined_call_operand.vmem [shape: f32[45], index: 0, kind: input, shape index: {}]   ;;  %s693_s1 = inlined_call_operand.vmem [shape: f32[15], index: 1, kind: input, shape index: {}]   ;;  %s694_s2 = inlined_call_operand.vmem [shape: f32[3,8,128], index: 2, kind: input, shape index: {}]   ;;  %s695_s3 = inlined_call_operand.vmem [shape: f32[5,8,128], index: 3, kind: input, shape index: {}]   ;;  %s696_s4 = inlined_call_operand.vmem [shape: f32[3,8,128], index: 4, kind: output, shape index: {}]  }
   0x1   :  { %s17_s17 = sshll.u32 %s692_s0, 4  ;;  %s18_s17 = int_to_ptr.vmem [resolvable:$true] %s17_s17 }
   0x2   :  { %10 = vsyncpa [#allocation5], 0  ;;  %s27_s20 = sshll.u32 %s693_s1, 4  ;;  %s375_s21 = scalar_lea.vmem %s18_s17, 16  ;;  %s28_s20 = int_to_ptr.vmem [resolvable:$true] %s27_s20 }
   0x3   :  { %p376_p0 = scmp.ne.s32.totalorder %s18_s17, %s375_s21  ;;  %p380_p1 = scmp.lt.s32.totalorder %s18_s17, %s18_s17 }
   0x4   :  { %p381_p2 = scmp.lt.s32.totalorder %s375_s21, %s375_s21 }
   0x6   :  { %p382_p3 = por %p381_p2, %p380_p1 }
   0x8   :  { %p383_p4 = pnand %p382_p3, %p376_p0 }
   0xa   :  { %386 = shalt.err (!%p383_p4)
}
   0xb   :  { %s403_s22 = smov [#allocation2]   ;;  %s387_s23 = scalar_lea.vmem %s28_s20, 16 }
   0xc   :  { %20 = dma.vmem_to_smem %s18_s17, 16, %s403_s22, [#allocation3]  }
   0xd   :  { %p388_p5 = scmp.ne.s32.totalorder %s28_s20, %s387_s23  ;;  %p392_p6 = scmp.lt.s32.totalorder %s28_s20, %s28_s20 }
   0xe   :  { %p393_p7 = scmp.lt.s32.totalorder %s387_s23, %s387_s23 }
  0x10   :  { %p394_p8 = por %p393_p7, %p392_p6 }
  0x12   :  { %p395_p9 = pnand %p394_p8, %p388_p5 }
  0x14   :  { %398 = shalt.err (!%p395_p9)
}
  0x15   :  { %s404_s0 = smov [#allocation4]  }
  0x16   :  { %30 = dma.vmem_to_smem %s28_s20, 16, %s404_s0, [#allocation5]  }
  0x17   :  { %399 = dma.done.wait [#allocation3], 16  }
  0x18   :  { %400 = vsyncadd [#allocation3], 4294967280 }
  0x19   :  { %401 = dma.done.wait [#allocation5], 16  }
  0x1a   :  { %402 = vsyncadd [#allocation5], 4294967280 }
  0x1b   :  { %41 = sfence }
  0x1c   :  { %s48_s1 = sld [smem:[#allocation2]]  ;;  %s309_s24 = sld [smem:[#allocation2 + $0x1]]  ;;  %v439_v0 = vld [vmem:[%s694_s2] sm:$0xff]  ;;  %v448_v1 = vld [vmem:[%s694_s2 + $0x8] sm:$0xff]  ;;  %v461_v3 = vld [vmem:[%s694_s2 + $0x10] sm:$0xff] }
  0x1d   :  { %s310_s25 = sld [smem:[#allocation2 + $0x2]]  ;;  %s311_s26 = sld [smem:[#allocation2 + $0x3]]  ;;  %v47_v49 = vld [vmem:[%s695_s3] sm:$0xff]  ;;  %v541_v54 = vld [vmem:[%s695_s3 + $0x8] sm:$0xff] }
  0x1e   :  { %s312_s27 = sld [smem:[#allocation2 + $0x4]]  ;;  %s313_s28 = sld [smem:[#allocation2 + $0x5]] }
  0x1f   :  { %s441_s5 = sld [smem:[#allocation4]]  ;;  %s443_s6 = sld [smem:[#allocation2 + $0x6]] }
  0x20   :  { %s450_s9 = sld [smem:[#allocation2 + $0x7]]  ;;  %s452_s10 = sld [smem:[#allocation2 + $0x8]] }
  0x21   :  { %s454_s11 = sld [smem:[#allocation4 + $0x1]]  ;;  %s464_s15 = sld [smem:[#allocation2 + $0xa]] }
  0x22   :  { %v49_v2 = vstv %s48_s1  ;;  %s456_s12 = sld [smem:[#allocation2 + $0x9]]  ;;  %v52_v5 = vstv %s309_s24  ;;  %s466_s16 = sld [smem:[#allocation2 + $0xb]] }
  0x23   :  { %v50_v4 = vmul.f32 %v49_v2, %v439_v0  ;;  %v56_v6 = vstv %s310_s25  ;;  %v53_v7 = vmul.f32 %v448_v1, %v52_v5  ;;  %v65_v8 = vstv %s311_s26  ;;  %s469_s17 = sld [smem:[#allocation4 + $0x2]]  ;;  %s471_s18 = sld [smem:[#allocation2 + $0xc]] }
  0x24   :  { %v66_v9 = vmul.f32 %v65_v8, %v439_v0  ;;  %v68_v10 = vstv %s312_s27  ;;  %v72_v11 = vstv %s313_s28  ;;  %s474_s2 = sld [smem:[#allocation2 + $0xd]]  ;;  %s476_s19 = sld [smem:[#allocation2 + $0xe]]  ;;  %v57_v13 = vmul.f32 %v461_v3, %v56_v6 }
  0x25   :  { %v54_v12 = vadd.f32 %v53_v7, %v50_v4  ;;  %v69_v14 = vmul.f32 %v448_v1, %v68_v10  ;;  %s480_s20 = sld [smem:[#allocation4 + $0x3]]  ;;  %v73_v15 = vmul.f32 %v461_v3, %v72_v11  ;;  %v81_v16 = vstv %s443_s6  ;;  %s486_s21 = sld [smem:[#allocation2 + $0xf]] }
  0x26   :  { %v84_v17 = vstv %s450_s9  ;;  %v88_v18 = vstv %s452_s10  ;;  %s488_s22 = sld [smem:[#allocation2 + $0x10]]  ;;  %v82_v20 = vmul.f32 %v81_v16, %v439_v0  ;;  %s492_s23 = sld [smem:[#allocation4 + $0x4]]  ;;  %v60_v26 = vstv %s441_s5 }
  0x27   :  { %v70_v19 = vadd.f32 %v69_v14, %v66_v9  ;;  %v85_v21 = vmul.f32 %v448_v1, %v84_v17  ;;  %v89_v22 = vmul.f32 %v461_v3, %v88_v18  ;;  %v102_v24 = vstv %s464_s15  ;;  %s497_s0 = sld [smem:[#allocation2 + $0x11]]  ;;  %s499_s1 = sld [smem:[#allocation2 + $0x12]] }
  0x28   :  { %v99_v23 = vstv %s456_s12  ;;  %v58_v25 = vadd.f32 %v57_v13, %v54_v12  ;;  %v103_v30 = vmul.f32 %v448_v1, %v102_v24  ;;  %v106_v31 = vstv %s466_s16  ;;  %s506_s24 = sld [smem:[#allocation2 + $0x13]]  ;;  %s508_s25 = sld [smem:[#allocation2 + $0x14]] }
  0x29   :  { %v86_v27 = vadd.f32 %v85_v21, %v82_v20  ;;  %v100_v28 = vmul.f32 %v99_v23, %v439_v0  ;;  %v74_v29 = vadd.f32 %v73_v15, %v70_v19  ;;  %v115_v32 = vstv %s471_s18  ;;  %s513_s26 = sld [smem:[#allocation2 + $0x15]]  ;;  %s518_s27 = sld [smem:[#allocation2 + $0x16]] }
  0x2a   :  { %v76_v33 = vstv %s454_s11  ;;  %v92_v35 = vstv %s469_s17  ;;  %v107_v36 = vmul.f32 %v461_v3, %v106_v31  ;;  %v116_v38 = vmul.f32 %v115_v32, %v439_v0  ;;  %s520_s28 = sld [smem:[#allocation2 + $0x17]]  ;;  %s525_s29 = sld [smem:[#allocation4 + $0x5]] }
  0x2b   :  { %v90_v34 = vadd.f32 %v89_v22, %v86_v27  ;;  %v104_v37 = vadd.f32 %v103_v30, %v100_v28  ;;  %v118_v39 = vstv %s474_s2  ;;  %v122_v40 = vstv %s476_s19  ;;  %s529_s30 = sld [smem:[#allocation4 + $0x6]]  ;;  %s531_s5 = sld [smem:[#allocation2 + $0x18]] }
  0x2c   :  { %v61_v41 = vadd.f32 %v60_v26, %v58_v25  ;;  %v110_v42 = vstv %s480_s20  ;;  %v119_v43 = vmul.f32 %v448_v1, %v118_v39  ;;  %v123_v44 = vmul.f32 %v461_v3, %v122_v40  ;;  %s546_s10 = sld [smem:[#allocation2 + $0x19]]  ;;  %s548_s11 = sld [smem:[#allocation2 + $0x1a]] }
  0x2d   :  { %v77_v45 = vadd.f32 %v76_v33, %v74_v29  ;;  %v108_v46 = vadd.f32 %v107_v36, %v104_v37  ;;  %v131_v47 = vstv %s486_s21  ;;  %v134_v48 = vstv %s488_s22  ;;  %s552_s12 = sld [smem:[#allocation4 + $0x7]]  ;;  %s554_s13 = sld [smem:[#allocation2 + $0x1b]] }
  0x2e   :  { %v93_v50 = vadd.f32 %v92_v35, %v90_v34  ;;  %v120_v51 = vadd.f32 %v119_v43, %v116_v38  ;;  %v132_v52 = vmul.f32 %v131_v47, %v439_v0  ;;  %v135_v53 = vmul.f32 %v448_v1, %v134_v48  ;;  %s558_s14 = sld [smem:[#allocation2 + $0x1c]]  ;;  %s560_s15 = sld [smem:[#allocation2 + $0x1d]]  ;;  %v600_v34 = vld [vmem:[%s695_s3 + $0x10] sm:$0xff] }
  0x2f   :  { %v111_v55 = vadd.f32 %v110_v42, %v108_v46  ;;  %v126_v56 = vstv %s492_s23  ;;  %v138_v57 = vstv %s497_s0  ;;  %v149_v58 = vstv %s499_s1  ;;  %s568_s16 = sld [smem:[#allocation2 + $0x1e]]  ;;  %s572_s17 = sld [smem:[#allocation4 + $0x8]] }
  0x30   :  { %v124_v59 = vadd.f32 %v123_v44, %v120_v51  ;;  %v136_v60 = vadd.f32 %v135_v53, %v132_v52  ;;  %v139_v61 = vmul.f32 %v461_v3, %v138_v57  ;;  %v150_v62 = vmul.f32 %v149_v58, %v439_v0  ;;  %s574_s18 = sld [smem:[#allocation4 + $0x9]]  ;;  %s580_s2 = sld [smem:[#allocation2 + $0x1f]] }
  0x31   :  { %v62_v63 = vmul.f32 %v61_v41, %v47_v49  ;;  %v78_v2 = vmul.f32 %v77_v45, %v47_v49  ;;  %v152_v4 = vstv %s506_s24  ;;  %v156_v5 = vstv %s508_s25  ;;  %s582_s19 = sld [smem:[#allocation2 + $0x20]]  ;;  %s586_s20 = sld [smem:[#allocation2 + $0x21]] }
  0x32   :  { %v112_v6 = vmul.f32 %v541_v54, %v111_v55  ;;  %v127_v7 = vadd.f32 %v126_v56, %v124_v59  ;;  %v153_v8 = vmul.f32 %v448_v1, %v152_v4  ;;  %v157_v9 = vmul.f32 %v461_v3, %v156_v5  ;;  %s590_s21 = sld [smem:[#allocation2 + $0x22]]  ;;  %s592_s22 = sld [smem:[#allocation2 + $0x23]] }
  0x33   :  { %v140_v10 = vadd.f32 %v139_v61, %v136_v60  ;;  %v165_v11 = vstv %s513_s26  ;;  %v168_v12 = vstv %s518_s27  ;;  %v172_v13 = vstv %s520_s28  ;;  %s605_s1 = sld [smem:[#allocation4 + $0xa]]  ;;  %s607_s24 = sld [smem:[#allocation2 + $0x24]] }
  0x34   :  { %v94_v14 = vmul.f32 %v93_v50, %v47_v49  ;;  %v142_v15 = vstv %s525_s29  ;;  %v154_v16 = vadd.f32 %v153_v8, %v150_v62  ;;  %v166_v17 = vmul.f32 %v165_v11, %v439_v0  ;;  %s611_s25 = sld [smem:[#allocation4 + $0xb]]  ;;  %s616_s26 = sld [smem:[#allocation2 + $0x25]] }
  0x35   :  { %v160_v18 = vstv %s529_s30  ;;  %v169_v19 = vmul.f32 %v448_v1, %v168_v12  ;;  %v173_v20 = vmul.f32 %v461_v3, %v172_v13  ;;  %v181_v21 = vstv %s531_s5  ;;  %s618_s27 = sld [smem:[#allocation2 + $0x26]]  ;;  %s623_s28 = sld [smem:[#allocation2 + $0x27]] }
  0x36   :  { %v113_v22 = vadd.f32 %v112_v6, %v62_v63  ;;  %v128_v23 = vmul.f32 %v541_v54, %v127_v7  ;;  %v158_v24 = vadd.f32 %v157_v9, %v154_v16  ;;  %v182_v25 = vmul.f32 %v181_v21, %v439_v0  ;;  %s628_s29 = sld [smem:[#allocation2 + $0x28]]  ;;  %s630_s30 = sld [smem:[#allocation2 + $0x29]]  ;;  %v345_v6 = vld [vmem:[%s695_s3 + $0x18] sm:$0xff] }
  0x37   :  { %v143_v26 = vadd.f32 %v142_v15, %v140_v10  ;;  %v170_v27 = vadd.f32 %v169_v19, %v166_v17  ;;  %v184_v28 = vstv %s546_s10  ;;  %v188_v29 = vstv %s548_s11  ;;  %s638_s5 = sld [smem:[#allocation4 + $0xc]]  ;;  %s640_s6 = sld [smem:[#allocation2 + $0x2a]] }
  0x38   :  { %v161_v30 = vadd.f32 %v160_v18, %v158_v24  ;;  %v176_v31 = vstv %s552_s12  ;;  %v185_v32 = vmul.f32 %v448_v1, %v184_v28  ;;  %v189_v33 = vmul.f32 %v461_v3, %v188_v29  ;;  %s643_s7 = sld [smem:[#allocation4 + $0xd]]  ;;  %s652_s10 = sld [smem:[#allocation2 + $0x2b]] }
  0x39   :  { %v174_v35 = vadd.f32 %v173_v20, %v170_v27  ;;  %v199_v36 = vstv %s554_s13  ;;  %v202_v37 = vstv %s558_s14  ;;  %v206_v38 = vstv %s560_s15  ;;  %s654_s11 = sld [smem:[#allocation2 + $0x2c]]  ;;  %s665_s12 = sld [smem:[#allocation4 + $0xe]] }
  0x3a   :  { %v129_v39 = vadd.f32 %v128_v23, %v78_v2  ;;  %v186_v40 = vadd.f32 %v185_v32, %v182_v25  ;;  %v200_v41 = vmul.f32 %v199_v36, %v439_v0  ;;  %v203_v42 = vmul.f32 %v448_v1, %v202_v37 }
  0x3b   :  { %v144_v43 = vmul.f32 %v541_v54, %v143_v26  ;;  %v177_v44 = vadd.f32 %v176_v31, %v174_v35  ;;  %v207_v45 = vmul.f32 %v461_v3, %v206_v38  ;;  %v215_v46 = vstv %s568_s16 }
  0x3c   :  { %v162_v47 = vmul.f32 %v600_v34, %v161_v30  ;;  %v192_v48 = vstv %s572_s17  ;;  %v204_v49 = vadd.f32 %v203_v42, %v200_v41  ;;  %v216_v50 = vmul.f32 %v215_v46, %v439_v0 }
  0x3d   :  { %v190_v51 = vadd.f32 %v189_v33, %v186_v40  ;;  %v210_v52 = vstv %s574_s18  ;;  %v218_v53 = vstv %s580_s2  ;;  %v222_v54 = vstv %s582_s19 }
  0x3e   :  { %v178_v55 = vmul.f32 %v600_v34, %v177_v44  ;;  %v208_v56 = vadd.f32 %v207_v45, %v204_v49  ;;  %v219_v57 = vmul.f32 %v448_v1, %v218_v53  ;;  %v223_v58 = vmul.f32 %v461_v3, %v222_v54 }
  0x3f   :  { %v145_v59 = vadd.f32 %v144_v43, %v94_v14  ;;  %v231_v60 = vstv %s586_s20  ;;  %v234_v61 = vstv %s590_s21  ;;  %v238_v62 = vstv %s592_s22 }
  0x40   :  { %v163_v63 = vadd.f32 %v162_v47, %v113_v22  ;;  %v211_v2 = vadd.f32 %v210_v52, %v208_v56  ;;  %v220_v4 = vadd.f32 %v219_v57, %v216_v50  ;;  %v232_v5 = vmul.f32 %v231_v60, %v439_v0 }
  0x41   :  { %v226_v7 = vstv %s605_s1  ;;  %v235_v8 = vmul.f32 %v448_v1, %v234_v61  ;;  %v239_v9 = vmul.f32 %v461_v3, %v238_v62  ;;  %v249_v10 = vstv %s607_s24 }
  0x42   :  { %v179_v11 = vadd.f32 %v178_v55, %v129_v39  ;;  %v193_v12 = vadd.f32 %v192_v48, %v190_v51  ;;  %v224_v13 = vadd.f32 %v223_v58, %v220_v4  ;;  %v250_v14 = vmul.f32 %v249_v10, %v439_v0 }
  0x43   :  { %v236_v15 = vadd.f32 %v235_v8, %v232_v5  ;;  %v242_v16 = vstv %s611_s25  ;;  %v252_v17 = vstv %s616_s26  ;;  %v256_v18 = vstv %s618_s27 }
  0x44   :  { %v212_v19 = vmul.f32 %v345_v6, %v211_v2  ;;  %v227_v20 = vadd.f32 %v226_v7, %v224_v13  ;;  %v253_v21 = vmul.f32 %v448_v1, %v252_v17  ;;  %v257_v22 = vmul.f32 %v461_v3, %v256_v18 }
  0x45   :  { %v240_v23 = vadd.f32 %v239_v9, %v236_v15  ;;  %v265_v24 = vstv %s623_s28  ;;  %v268_v25 = vstv %s628_s29  ;;  %v272_v26 = vstv %s630_s30 }
  0x46   :  { %v194_v27 = vmul.f32 %v600_v34, %v193_v12  ;;  %v254_v28 = vadd.f32 %v253_v21, %v250_v14  ;;  %v266_v29 = vmul.f32 %v265_v24, %v439_v0  ;;  %v269_v30 = vmul.f32 %v448_v1, %v268_v25  ;;  %v358_v34 = vld [vmem:[%s695_s3 + $0x20] sm:$0xff] }
  0x47   :  { %v228_v31 = vmul.f32 %v345_v6, %v227_v20  ;;  %v260_v32 = vstv %s638_s5  ;;  %v273_v33 = vmul.f32 %v461_v3, %v272_v26  ;;  %v281_v35 = vstv %s640_s6 }
  0x48   :  { %v243_v36 = vadd.f32 %v242_v16, %v240_v23  ;;  %v258_v37 = vadd.f32 %v257_v22, %v254_v28  ;;  %v270_v38 = vadd.f32 %v269_v30, %v266_v29  ;;  %v282_v39 = vmul.f32 %v281_v35, %v439_v0 }
  0x49   :  { %v213_v40 = vadd.f32 %v212_v19, %v163_v63  ;;  %v276_v41 = vstv %s643_s7  ;;  %v284_v42 = vstv %s652_s10  ;;  %v288_v43 = vstv %s654_s11 }
  0x4a   :  { %v261_v44 = vadd.f32 %v260_v32, %v258_v37  ;;  %v274_v45 = vadd.f32 %v273_v33, %v270_v38  ;;  %v285_v46 = vmul.f32 %v448_v1, %v284_v42  ;;  %v289_v47 = vmul.f32 %v461_v3, %v288_v43 }
  0x4b   :  { %v195_v48 = vadd.f32 %v194_v27, %v145_v59  ;;  %v229_v49 = vadd.f32 %v228_v31, %v179_v11  ;;  %v244_v50 = vmul.f32 %v345_v6, %v243_v36  ;;  %v292_v53 = vstv %s665_s12 }
  0x4c   :  { %v262_v51 = vmul.f32 %v358_v34, %v261_v44  ;;  %v277_v0 = vadd.f32 %v276_v41, %v274_v45  ;;  %v286_v52 = vadd.f32 %v285_v46, %v282_v39 }
  0x4d   :  { %v245_v57 = vadd.f32 %v244_v50, %v195_v48 }
  0x4e   :  { %v263_v54 = vadd.f32 %v262_v51, %v213_v40  ;;  %v278_v55 = vmul.f32 %v358_v34, %v277_v0  ;;  %v290_v56 = vadd.f32 %v289_v47, %v286_v52 }
  0x50   :  { %v279_v58 = vadd.f32 %v278_v55, %v229_v49  ;;  %v293_v60 = vadd.f32 %v292_v53, %v290_v56  ;;  %296 = vst [vmem:[%s696_s4] sm:$0xff] %v263_v54 }
  0x52   :  { %v294_v1 = vmul.f32 %v358_v34, %v293_v60  ;;  %371 = vst [vmem:[%s696_s4 + $0x8] sm:$0xff] %v279_v58 }
  0x54   :  { %v295_v3 = vadd.f32 %v294_v1, %v245_v57 }
  0x56   :  { %372 = vst [vmem:[%s696_s4 + $0x10] sm:$0xff] %v295_v3 }
  0x57   :  { %305 = vsyncpa [#allocation3], 1 }
  0x58   :  { %306 = vsyncpa [#allocation5], 1 }

</bundles_post_ra>
